<compile_context>
chip_gen: v7x
topology: tpu7x:2x2x1
jax: 0.10.0
libtpu: 0.0.40
codegen_flags: <defaults>
</compile_context>

<pallas_src>
import math
import functools

import numpy as np
import jax
import jax.numpy as jnp
from jax.experimental import pallas as pl
from jax.experimental.pallas import tpu as pltpu

# ----------------------------- test configuration (small, consistent w/ module)
B = 2        # batch
L = 8        # sequence length
D = 32       # hidden_dim
H = 4        # num_heads  (hidden_dim % num_heads == 0)
DH = D // H  # head_dim
FF = 64      # feedforward_dim
EPS = 1e-5   # LayerNorm eps (PyTorch default)

LANE = 128


def _round_up(v, m):
    return (v + m - 1) // m * m


# ------------------------------------------------------------------- kernel ---
def transformer_block_kernel(
    x_ref,       # (L, Dp)       one batch's tokens, zero-padded to 128 lanes
    wqkv_ref,    # (Dp, 3*Dp)    [wq*scale | wk | wv], zero-padded
    wo_ref,      # (Dp, Dp)      zero-padded
    w1_ref,      # (Dp, Fp)      zero-padded
    w2_ref,      # (Fp, Dp)      zero-padded
    vec_ref,     # (8, W)        packed biases/scales, one padded vector per row
    hmask_ref,   # (H*L, Dp)     static per-head feature mask (built in wrapper)
    o_ref,       # (L, Dp)
    *, hidden_dim, num_heads, eps,
):
    seqlen, dp = x_ref.shape
    fp = w1_ref.shape[1]
    inv_d = 1.0 / hidden_dim

    x = x_ref[...]                                   # (L, Dp), pad lanes are 0

    # ---- packed parameter slab (all lane-aligned slices) ---------------------
    bqkv = vec_ref[0:1, :3 * dp]                     # (1, 3*Dp)
    bo   = vec_ref[1:2, :dp]
    g1   = vec_ref[2:3, :dp]
    be1  = vec_ref[3:4, :dp]
    b1   = vec_ref[4:5, :fp]
    b2   = vec_ref[5:6, :dp]
    g2   = vec_ref[6:7, :dp]
    be2  = vec_ref[7:8, :dp]

    # ---- fused QKV projection (attention scale pre-folded into wq / bq) ------
    qkv = jnp.dot(x, wqkv_ref[...], preferred_element_type=jnp.float32) + bqkv
    q = qkv[:, 0:dp]                                 # lane-aligned slices
    k = qkv[:, dp:2 * dp]
    v = qkv[:, 2 * dp:3 * dp]

    # ---- all heads at once: replicate queries, mask per-head features --------
    hmask = hmask_ref[...]                           # (H*L, Dp), static 0/1
    qm = jnp.tile(q, (num_heads, 1)) * hmask         # (H*L, Dp)
    s = jnp.dot(qm, k.T, preferred_element_type=jnp.float32)   # (H*L, L)
    s = s - jnp.max(s, axis=-1, keepdims=True)
    p = jnp.exp(s)
    p = p * pl.reciprocal(jnp.sum(p, axis=-1, keepdims=True), approx=True)
    av = jnp.dot(p, v, preferred_element_type=jnp.float32) * hmask  # (H*L, Dp)

    attn = av[0:seqlen]                              # head-sum (disjoint lanes)
    for h in range(1, num_heads):
        attn = attn + av[h * seqlen:(h + 1) * seqlen]
    attn = jnp.dot(attn, wo_ref[...], preferred_element_type=jnp.float32) + bo

    # ---- residual + LayerNorm1 (stats over the real D lanes only) ------------
    y = x + attn
    mu = jnp.sum(y, axis=-1, keepdims=True) * inv_d
    var = jnp.sum(y * y, axis=-1, keepdims=True) * inv_d - mu * mu
    y = (y - mu) * jax.lax.rsqrt(var + eps) * g1 + be1   # g1/be1 pad=0 -> pad lanes 0

    # ---- MLP: Linear -> ReLU -> Linear ---------------------------------------
    h1 = jnp.dot(y, w1_ref[...], preferred_element_type=jnp.float32) + b1
    h1 = jnp.maximum(h1, 0.0)
    h2 = jnp.dot(h1, w2_ref[...], preferred_element_type=jnp.float32) + b2

    # ---- residual + LayerNorm2 ------------------------------------------------
    z = y + h2
    mu = jnp.sum(z, axis=-1, keepdims=True) * inv_d
    var = jnp.sum(z * z, axis=-1, keepdims=True) * inv_d - mu * mu
    z = (z - mu) * jax.lax.rsqrt(var + eps) * g2 + be2

    o_ref[...] = z.astype(o_ref.dtype)               # dense 128-lane store


# ------------------------------------------------------------------ wrapper ---
@functools.partial(jax.jit, static_argnames=("num_heads",))
def transformer_block(x, params, *, num_heads):
    # self-attention path only (memory=None).  TODO(synk): cross-attention memory path.
    Bc, Lc, Dc = x.shape
    Fc = params["w1"].shape[1]
    DHc = Dc // num_heads
    Dp = _round_up(Dc, LANE)
    Fp = _round_up(Fc, LANE)
    W = max(3 * Dp, Fp)
    f32 = jnp.float32
    scale = 1.0 / math.sqrt(DHc)

    # one-time param transforms (layout plumbing, not runtime compute):
    #  - scale folded into wq / bq
    #  - fused QKV weight padded so q/k/v land at lane offsets 0 / Dp / 2*Dp
    #  - every weight zero-padded to 128-lane multiples
    wqkv = jnp.zeros((Dp, 3 * Dp), f32)
    wqkv = wqkv.at[:Dc, 0:Dc].set(params["wq"] * scale)
    wqkv = wqkv.at[:Dc, Dp:Dp + Dc].set(params["wk"])
    wqkv = wqkv.at[:Dc, 2 * Dp:2 * Dp + Dc].set(params["wv"])
    wo = jnp.zeros((Dp, Dp), f32).at[:Dc, :Dc].set(params["wo"])
    w1 = jnp.zeros((Dp, Fp), f32).at[:Dc, :Fc].set(params["w1"])
    w2 = jnp.zeros((Fp, Dp), f32).at[:Fc, :Dc].set(params["w2"])

    # packed bias/scale slab: one zero-padded vector per row (generalizes to any D/FF)
    vec = jnp.zeros((8, W), f32)
    vec = vec.at[0, 0:Dc].set(params["bq"][0] * scale)
    vec = vec.at[0, Dp:Dp + Dc].set(params["bk"][0])
    vec = vec.at[0, 2 * Dp:2 * Dp + Dc].set(params["bv"][0])
    vec = vec.at[1, :Dc].set(params["bo"][0])
    vec = vec.at[2, :Dc].set(params["g1"][0])
    vec = vec.at[3, :Dc].set(params["be1"][0])
    vec = vec.at[4, :Fc].set(params["b1"][0])
    vec = vec.at[5, :Dc].set(params["b2"][0])
    vec = vec.at[6, :Dc].set(params["g2"][0])
    vec = vec.at[7, :Dc].set(params["be2"][0])

    # static head feature mask, built at trace time (no in-kernel iota work)
    hm = np.zeros((num_heads * Lc, Dp), np.float32)
    for h in range(num_heads):
        hm[h * Lc:(h + 1) * Lc, h * DHc:(h + 1) * DHc] = 1.0
    hmask = jnp.asarray(hm)

    # tokens presented as (B*L, Dp), zero-padded lanes beyond D
    xp = jnp.zeros((Bc * Lc, Dp), x.dtype).at[:, :Dc].set(x.reshape(Bc * Lc, Dc))

    kernel = functools.partial(
        transformer_block_kernel,
        hidden_dim=Dc, num_heads=num_heads, eps=EPS)

    const2 = lambda b: (0, 0)   # weights / slab / mask stay VMEM-resident

    out = pl.pallas_call(
        kernel,
        out_shape=jax.ShapeDtypeStruct((Bc * Lc, Dp), x.dtype),
        grid_spec=pltpu.PrefetchScalarGridSpec(
            num_scalar_prefetch=0,
            grid=(Bc,),                               # batch axis, parallel (2 TCs on v7x)
            in_specs=[
                pl.BlockSpec((Lc, Dp), lambda b: (b, 0)),      # x tokens (per batch)
                pl.BlockSpec((Dp, 3 * Dp), const2),            # wqkv (padded, fused)
                pl.BlockSpec((Dp, Dp), const2),                # wo
                pl.BlockSpec((Dp, Fp), const2),                # w1
                pl.BlockSpec((Fp, Dp), const2),                # w2
                pl.BlockSpec((8, W), const2),                  # packed bias/scale slab
                pl.BlockSpec((num_heads * Lc, Dp), const2),    # head mask
            ],
            out_specs=pl.BlockSpec((Lc, Dp), lambda b: (b, 0)),
        ),
        compiler_params=pltpu.CompilerParams(
            dimension_semantics=("parallel",),
            vmem_limit_bytes=32 * 1024 * 1024),
    )(xp, wqkv, wo, w1, w2, vec, hmask)

    return out[:, :Dc].reshape(Bc, Lc, Dc)


# --------------------------------------------------------- pure-JAX reference --
def reference(x, kv, p):
    def ln(v, g, b):
        mu = jnp.mean(v, axis=-1, keepdims=True)
        var = jnp.mean(jnp.square(v - mu), axis=-1, keepdims=True)
        return (v - mu) / jnp.sqrt(var + EPS) * g + b

    q = x @ p["wq"] + p["bq"]
    k = kv @ p["wk"] + p["bk"]
    v = kv @ p["wv"] + p["bv"]
    qh = q.reshape(B, L, H, DH).transpose(0, 2, 1, 3)
    kh = k.reshape(B, -1, H, DH).transpose(0, 2, 1, 3)
    vh = v.reshape(B, -1, H, DH).transpose(0, 2, 1, 3)
    s = jnp.einsum("bhld,bhmd->bhlm", qh, kh) / math.sqrt(DH)
    a = jax.nn.softmax(s, axis=-1)
    o = jnp.einsum("bhlm,bhmd->bhld", a, vh).transpose(0, 2, 1, 3).reshape(B, L, D)
    o = o @ p["wo"] + p["bo"]
    x = ln(x + o, p["g1"], p["be1"])
    h = jnp.maximum(x @ p["w1"] + p["b1"], 0.0)
    h = h @ p["w2"] + p["b2"]
    return ln(x + h, p["g2"], p["be2"])


# --------------------------------------------------------------------- main ---
if __name__ == "__main__":
    key = jax.random.PRNGKey(0)
    ks = jax.random.split(key, 16)

    scale = 0.05
    params = {
        "wq": scale * jax.random.normal(ks[0], (D, D), jnp.float32),
        "wk": scale * jax.random.normal(ks[1], (D, D), jnp.float32),
        "wv": scale * jax.random.normal(ks[2], (D, D), jnp.float32),
        "bq": scale * jax.random.normal(ks[3], (1, D), jnp.float32),
        "bk": scale * jax.random.normal(ks[4], (1, D), jnp.float32),
        "bv": scale * jax.random.normal(ks[5], (1, D), jnp.float32),
        "wo": scale * jax.random.normal(ks[6], (D, D), jnp.float32),
        "bo": scale * jax.random.normal(ks[7], (1, D), jnp.float32),
        "g1": 1.0 + scale * jax.random.normal(ks[8], (1, D), jnp.float32),
        "be1": scale * jax.random.normal(ks[9], (1, D), jnp.float32),
        "w1": scale * jax.random.normal(ks[10], (D, FF), jnp.float32),
        "b1": scale * jax.random.normal(ks[11], (1, FF), jnp.float32),
        "w2": scale * jax.random.normal(ks[12], (FF, D), jnp.float32),
        "b2": scale * jax.random.normal(ks[13], (1, D), jnp.float32),
        "g2": 1.0 + scale * jax.random.normal(ks[14], (1, D), jnp.float32),
        "be2": scale * jax.random.normal(ks[15], (1, D), jnp.float32),
    }

    x = jax.random.normal(jax.random.PRNGKey(1), (B, L, D), jnp.float32)

    out = transformer_block(x, params, num_heads=H)
    out = jax.block_until_ready(out)

    ref = reference(x, x, params)   # memory=None -> self-attention
    assert out.shape == (B, L, D)
    assert jnp.allclose(out, ref, atol=1e-2, rtol=1e-2), (
        float(jnp.max(jnp.abs(out - ref))))

    print("KERNEL_OK")
</pallas_src>

<mosaic_0001>
module attributes {stable_mosaic.version = 11 : i64} {
  func.func @transformer_block_kernel(%arg0: i32, %arg1: memref<8x128xf32, #tpu.memory_space<vmem>>, %arg2: memref<128x384xf32, #tpu.memory_space<vmem>>, %arg3: memref<128x128xf32, #tpu.memory_space<vmem>>, %arg4: memref<128x128xf32, #tpu.memory_space<vmem>>, %arg5: memref<128x128xf32, #tpu.memory_space<vmem>>, %arg6: memref<8x384xf32, #tpu.memory_space<vmem>>, %arg7: memref<32x128xf32, #tpu.memory_space<vmem>>, %arg8: memref<8x128xf32, #tpu.memory_space<vmem>>) attributes {dimension_semantics = [#tpu.dimension_semantics<parallel>], iteration_bounds = array<i64: 2>, scalar_prefetch = 0 : i64, scratch_operands = 0 : i64, tpu.core_type = #tpu.core_type<tc>, window_params = [{transform_indices = @transform_0, window_bounds = array<i64: 8, 128>}, {pipeline_mode = #tpu.pipeline_mode<synchronous>, transform_indices = @transform_1, window_bounds = array<i64: 128, 384>}, {pipeline_mode = #tpu.pipeline_mode<synchronous>, transform_indices = @transform_2, window_bounds = array<i64: 128, 128>}, {pipeline_mode = #tpu.pipeline_mode<synchronous>, transform_indices = @transform_3, window_bounds = array<i64: 128, 128>}, {pipeline_mode = #tpu.pipeline_mode<synchronous>, transform_indices = @transform_4, window_bounds = array<i64: 128, 128>}, {pipeline_mode = #tpu.pipeline_mode<synchronous>, transform_indices = @transform_5, window_bounds = array<i64: 8, 384>}, {pipeline_mode = #tpu.pipeline_mode<synchronous>, transform_indices = @transform_6, window_bounds = array<i64: 32, 128>}, {transform_indices = @transform_7, window_bounds = array<i64: 8, 128>}]} {
    %c0 = arith.constant 0 : index
    %c0_0 = arith.constant 0 : index
    %0 = vector.load %arg1[%c0, %c0_0] : memref<8x128xf32, #tpu.memory_space<vmem>>, vector<8x128xf32>
    %c0_1 = arith.constant 0 : index
    %c0_2 = arith.constant 0 : index
    %1 = vector.load %arg6[%c0_1, %c0_2] : memref<8x384xf32, #tpu.memory_space<vmem>>, vector<1x384xf32>
    %c1 = arith.constant 1 : index
    %c0_3 = arith.constant 0 : index
    %2 = vector.load %arg6[%c1, %c0_3] : memref<8x384xf32, #tpu.memory_space<vmem>>, vector<1x128xf32>
    %c2 = arith.constant 2 : index
    %c0_4 = arith.constant 0 : index
    %3 = vector.load %arg6[%c2, %c0_4] : memref<8x384xf32, #tpu.memory_space<vmem>>, vector<1x128xf32>
    %c3 = arith.constant 3 : index
    %c0_5 = arith.constant 0 : index
    %4 = vector.load %arg6[%c3, %c0_5] : memref<8x384xf32, #tpu.memory_space<vmem>>, vector<1x128xf32>
    %c4 = arith.constant 4 : index
    %c0_6 = arith.constant 0 : index
    %5 = vector.load %arg6[%c4, %c0_6] : memref<8x384xf32, #tpu.memory_space<vmem>>, vector<1x128xf32>
    %c5 = arith.constant 5 : index
    %c0_7 = arith.constant 0 : index
    %6 = vector.load %arg6[%c5, %c0_7] : memref<8x384xf32, #tpu.memory_space<vmem>>, vector<1x128xf32>
    %c6 = arith.constant 6 : index
    %c0_8 = arith.constant 0 : index
    %7 = vector.load %arg6[%c6, %c0_8] : memref<8x384xf32, #tpu.memory_space<vmem>>, vector<1x128xf32>
    %c7 = arith.constant 7 : index
    %c0_9 = arith.constant 0 : index
    %8 = vector.load %arg6[%c7, %c0_9] : memref<8x384xf32, #tpu.memory_space<vmem>>, vector<1x128xf32>
    %c0_10 = arith.constant 0 : index
    %c0_11 = arith.constant 0 : index
    %9 = vector.load %arg2[%c0_10, %c0_11] : memref<128x384xf32, #tpu.memory_space<vmem>>, vector<128x384xf32>
    %cst = arith.constant dense<0.000000e+00> : vector<8x384xf32>
    %10 = tpu.matmul %0, %9, %cst {dimension_numbers = #tpu.dot_dimension_numbers<[1], [0], [0], [1], [0, 0, 1, 1], [], []>} : vector<8x128xf32>, vector<128x384xf32>, vector<8x384xf32> -> vector<8x384xf32>
    %11 = vector.broadcast %1 : vector<1x384xf32> to vector<8x384xf32>
    %12 = arith.addf %10, %11 : vector<8x384xf32>
    %13 = vector.extract_strided_slice %12 {offsets = [0, 0], sizes = [8, 128], strides = [1, 1]} : vector<8x384xf32> to vector<8x128xf32>
    %14 = vector.extract_strided_slice %12 {offsets = [0, 128], sizes = [8, 128], strides = [1, 1]} : vector<8x384xf32> to vector<8x128xf32>
    %15 = vector.extract_strided_slice %12 {offsets = [0, 256], sizes = [8, 128], strides = [1, 1]} : vector<8x384xf32> to vector<8x128xf32>
    %c0_12 = arith.constant 0 : index
    %c0_13 = arith.constant 0 : index
    %16 = vector.load %arg7[%c0_12, %c0_13] : memref<32x128xf32, #tpu.memory_space<vmem>>, vector<32x128xf32>
    %17 = tpu.concatenate %13, %13, %13, %13 in 0 : vector<8x128xf32>, vector<8x128xf32>, vector<8x128xf32>, vector<8x128xf32> -> vector<32x128xf32>
    %18 = arith.mulf %17, %16 : vector<32x128xf32>
    %19 = tpu.transpose %14, [1, 0] : vector<8x128xf32> -> vector<128x8xf32>
    %cst_14 = arith.constant dense<0.000000e+00> : vector<32x8xf32>
    %20 = tpu.matmul %18, %19, %cst_14 {dimension_numbers = #tpu.dot_dimension_numbers<[1], [0], [0], [1], [0, 0, 1, 1], [], []>} : vector<32x128xf32>, vector<128x8xf32>, vector<32x8xf32> -> vector<32x8xf32>
    %cst_15 = arith.constant dense<0xFF800000> : vector<32xf32>
    %21 = vector.multi_reduction <maximumf>, %20, %cst_15 [1] : vector<32x8xf32> to vector<32xf32>
    %22 = vector.shape_cast %21 : vector<32xf32> to vector<32x1xf32>
    %23 = vector.broadcast %22 : vector<32x1xf32> to vector<32x8xf32>
    %24 = arith.subf %20, %23 : vector<32x8xf32>
    %25 = math.exp %24 : vector<32x8xf32>
    %cst_16 = arith.constant dense<0.000000e+00> : vector<32xf32>
    %26 = vector.multi_reduction <add>, %25, %cst_16 [1] : vector<32x8xf32> to vector<32xf32>
    %27 = vector.shape_cast %26 : vector<32xf32> to vector<32x1xf32>
    %28 = tpu.reciprocal %27 {approx = true} : vector<32x1xf32> -> vector<32x1xf32>
    %29 = vector.broadcast %28 : vector<32x1xf32> to vector<32x8xf32>
    %30 = arith.mulf %25, %29 : vector<32x8xf32>
    %cst_17 = arith.constant dense<0.000000e+00> : vector<32x128xf32>
    %31 = tpu.matmul %30, %15, %cst_17 {dimension_numbers = #tpu.dot_dimension_numbers<[1], [0], [0], [1], [0, 0, 1, 1], [], []>} : vector<32x8xf32>, vector<8x128xf32>, vector<32x128xf32> -> vector<32x128xf32>
    %32 = arith.mulf %31, %16 : vector<32x128xf32>
    %33 = vector.extract_strided_slice %32 {offsets = [0, 0], sizes = [8, 128], strides = [1, 1]} : vector<32x128xf32> to vector<8x128xf32>
    %34 = vector.extract_strided_slice %32 {offsets = [8, 0], sizes = [8, 128], strides = [1, 1]} : vector<32x128xf32> to vector<8x128xf32>
    %35 = arith.addf %33, %34 : vector<8x128xf32>
    %36 = vector.extract_strided_slice %32 {offsets = [16, 0], sizes = [8, 128], strides = [1, 1]} : vector<32x128xf32> to vector<8x128xf32>
    %37 = arith.addf %35, %36 : vector<8x128xf32>
    %38 = vector.extract_strided_slice %32 {offsets = [24, 0], sizes = [8, 128], strides = [1, 1]} : vector<32x128xf32> to vector<8x128xf32>
    %39 = arith.addf %37, %38 : vector<8x128xf32>
    %c0_18 = arith.constant 0 : index
    %c0_19 = arith.constant 0 : index
    %40 = vector.load %arg3[%c0_18, %c0_19] : memref<128x128xf32, #tpu.memory_space<vmem>>, vector<128x128xf32>
    %cst_20 = arith.constant dense<0.000000e+00> : vector<8x128xf32>
    %41 = tpu.matmul %39, %40, %cst_20 {dimension_numbers = #tpu.dot_dimension_numbers<[1], [0], [0], [1], [0, 0, 1, 1], [], []>} : vector<8x128xf32>, vector<128x128xf32>, vector<8x128xf32> -> vector<8x128xf32>
    %42 = vector.broadcast %2 : vector<1x128xf32> to vector<8x128xf32>
    %43 = arith.addf %41, %42 : vector<8x128xf32>
    %44 = arith.addf %0, %43 : vector<8x128xf32>
    %cst_21 = arith.constant dense<0.000000e+00> : vector<8xf32>
    %45 = vector.multi_reduction <add>, %44, %cst_21 [1] : vector<8x128xf32> to vector<8xf32>
    %46 = vector.shape_cast %45 : vector<8xf32> to vector<8x1xf32>
    %cst_22 = arith.constant 3.125000e-02 : f32
    %47 = vector.broadcast %cst_22 : f32 to vector<8x1xf32>
    %48 = arith.mulf %46, %47 : vector<8x1xf32>
    %49 = arith.mulf %44, %44 : vector<8x128xf32>
    %cst_23 = arith.constant dense<0.000000e+00> : vector<8xf32>
    %50 = vector.multi_reduction <add>, %49, %cst_23 [1] : vector<8x128xf32> to vector<8xf32>
    %51 = vector.shape_cast %50 : vector<8xf32> to vector<8x1xf32>
    %cst_24 = arith.constant 3.125000e-02 : f32
    %52 = vector.broadcast %cst_24 : f32 to vector<8x1xf32>
    %53 = arith.mulf %51, %52 : vector<8x1xf32>
    %54 = arith.mulf %48, %48 : vector<8x1xf32>
    %55 = arith.subf %53, %54 : vector<8x1xf32>
    %56 = vector.broadcast %48 : vector<8x1xf32> to vector<8x128xf32>
    %57 = arith.subf %44, %56 : vector<8x128xf32>
    %cst_25 = arith.constant 9.99999974E-6 : f32
    %58 = vector.broadcast %cst_25 : f32 to vector<8x1xf32>
    %59 = arith.addf %55, %58 : vector<8x1xf32>
    %60 = math.rsqrt %59 : vector<8x1xf32>
    %61 = vector.broadcast %60 : vector<8x1xf32> to vector<8x128xf32>
    %62 = arith.mulf %57, %61 : vector<8x128xf32>
    %63 = vector.broadcast %3 : vector<1x128xf32> to vector<8x128xf32>
    %64 = arith.mulf %62, %63 : vector<8x128xf32>
    %65 = vector.broadcast %4 : vector<1x128xf32> to vector<8x128xf32>
    %66 = arith.addf %64, %65 : vector<8x128xf32>
    %c0_26 = arith.constant 0 : index
    %c0_27 = arith.constant 0 : index
    %67 = vector.load %arg4[%c0_26, %c0_27] : memref<128x128xf32, #tpu.memory_space<vmem>>, vector<128x128xf32>
    %cst_28 = arith.constant dense<0.000000e+00> : vector<8x128xf32>
    %68 = tpu.matmul %66, %67, %cst_28 {dimension_numbers = #tpu.dot_dimension_numbers<[1], [0], [0], [1], [0, 0, 1, 1], [], []>} : vector<8x128xf32>, vector<128x128xf32>, vector<8x128xf32> -> vector<8x128xf32>
    %69 = vector.broadcast %5 : vector<1x128xf32> to vector<8x128xf32>
    %70 = arith.addf %68, %69 : vector<8x128xf32>
    %cst_29 = arith.constant 0.000000e+00 : f32
    %71 = vector.broadcast %cst_29 : f32 to vector<8x128xf32>
    %72 = arith.maximumf %70, %71 : vector<8x128xf32>
    %c0_30 = arith.constant 0 : index
    %c0_31 = arith.constant 0 : index
    %73 = vector.load %arg5[%c0_30, %c0_31] : memref<128x128xf32, #tpu.memory_space<vmem>>, vector<128x128xf32>
    %cst_32 = arith.constant dense<0.000000e+00> : vector<8x128xf32>
    %74 = tpu.matmul %72, %73, %cst_32 {dimension_numbers = #tpu.dot_dimension_numbers<[1], [0], [0], [1], [0, 0, 1, 1], [], []>} : vector<8x128xf32>, vector<128x128xf32>, vector<8x128xf32> -> vector<8x128xf32>
    %75 = vector.broadcast %6 : vector<1x128xf32> to vector<8x128xf32>
    %76 = arith.addf %74, %75 : vector<8x128xf32>
    %77 = arith.addf %66, %76 : vector<8x128xf32>
    %cst_33 = arith.constant dense<0.000000e+00> : vector<8xf32>
    %78 = vector.multi_reduction <add>, %77, %cst_33 [1] : vector<8x128xf32> to vector<8xf32>
    %79 = vector.shape_cast %78 : vector<8xf32> to vector<8x1xf32>
    %cst_34 = arith.constant 3.125000e-02 : f32
    %80 = vector.broadcast %cst_34 : f32 to vector<8x1xf32>
    %81 = arith.mulf %79, %80 : vector<8x1xf32>
    %82 = arith.mulf %77, %77 : vector<8x128xf32>
    %cst_35 = arith.constant dense<0.000000e+00> : vector<8xf32>
    %83 = vector.multi_reduction <add>, %82, %cst_35 [1] : vector<8x128xf32> to vector<8xf32>
    %84 = vector.shape_cast %83 : vector<8xf32> to vector<8x1xf32>
    %cst_36 = arith.constant 3.125000e-02 : f32
    %85 = vector.broadcast %cst_36 : f32 to vector<8x1xf32>
    %86 = arith.mulf %84, %85 : vector<8x1xf32>
    %87 = arith.mulf %81, %81 : vector<8x1xf32>
    %88 = arith.subf %86, %87 : vector<8x1xf32>
    %89 = vector.broadcast %81 : vector<8x1xf32> to vector<8x128xf32>
    %90 = arith.subf %77, %89 : vector<8x128xf32>
    %cst_37 = arith.constant 9.99999974E-6 : f32
    %91 = vector.broadcast %cst_37 : f32 to vector<8x1xf32>
    %92 = arith.addf %88, %91 : vector<8x1xf32>
    %93 = math.rsqrt %92 : vector<8x1xf32>
    %94 = vector.broadcast %93 : vector<8x1xf32> to vector<8x128xf32>
    %95 = arith.mulf %90, %94 : vector<8x128xf32>
    %96 = vector.broadcast %7 : vector<1x128xf32> to vector<8x128xf32>
    %97 = arith.mulf %95, %96 : vector<8x128xf32>
    %98 = vector.broadcast %8 : vector<1x128xf32> to vector<8x128xf32>
    %99 = arith.addf %97, %98 : vector<8x128xf32>
    %c0_38 = arith.constant 0 : index
    %c0_39 = arith.constant 0 : index
    %100 = vector.load %arg8[%c0_38, %c0_39] : memref<8x128xf32, #tpu.memory_space<vmem>>, vector<8x128xf32>
    tpu.vector_store %arg8[%c0_38, %c0_39], %99 {strides = array<i32>} : memref<8x128xf32, #tpu.memory_space<vmem>>, vector<8x128xf32>,
    return
  }
  func.func @transform_0(%arg0: i32) -> (i32, i32) {
    %c0_i32 = arith.constant 0 : i32
    %c0_i32_0 = arith.constant 0 : i32
    return %arg0, %c0_i32 : i32, i32
  }
  func.func @transform_1(%arg0: i32) -> (i32, i32) {
    %c0_i32 = arith.constant 0 : i32
    %c0_i32_0 = arith.constant 0 : i32
    %c0_i32_1 = arith.constant 0 : i32
    return %c0_i32, %c0_i32_0 : i32, i32
  }
  func.func @transform_2(%arg0: i32) -> (i32, i32) {
    %c0_i32 = arith.constant 0 : i32
    %c0_i32_0 = arith.constant 0 : i32
    %c0_i32_1 = arith.constant 0 : i32
    return %c0_i32, %c0_i32_0 : i32, i32
  }
  func.func @transform_3(%arg0: i32) -> (i32, i32) {
    %c0_i32 = arith.constant 0 : i32
    %c0_i32_0 = arith.constant 0 : i32
    %c0_i32_1 = arith.constant 0 : i32
    return %c0_i32, %c0_i32_0 : i32, i32
  }
  func.func @transform_4(%arg0: i32) -> (i32, i32) {
    %c0_i32 = arith.constant 0 : i32
    %c0_i32_0 = arith.constant 0 : i32
    %c0_i32_1 = arith.constant 0 : i32
    return %c0_i32, %c0_i32_0 : i32, i32
  }
  func.func @transform_5(%arg0: i32) -> (i32, i32) {
    %c0_i32 = arith.constant 0 : i32
    %c0_i32_0 = arith.constant 0 : i32
    %c0_i32_1 = arith.constant 0 : i32
    return %c0_i32, %c0_i32_0 : i32, i32
  }
  func.func @transform_6(%arg0: i32) -> (i32, i32) {
    %c0_i32 = arith.constant 0 : i32
    %c0_i32_0 = arith.constant 0 : i32
    %c0_i32_1 = arith.constant 0 : i32
    return %c0_i32, %c0_i32_0 : i32, i32
  }
  func.func @transform_7(%arg0: i32) -> (i32, i32) {
    %c0_i32 = arith.constant 0 : i32
    %c0_i32_0 = arith.constant 0 : i32
    return %arg0, %c0_i32 : i32, i32
  }
}

</mosaic_0001>

<bundles_post_ra>
// kernel: transformer_block.1
= control target key start
LH: loop header
LB: loop body
LE: loop exit
PB: predicated region body
PF: predicated region fallthrough
CT: control target
= control target key end

     0   :  { %s1532_s24 = smov 0   ;;  %s1970_s0 = inlined_call_operand.vmem [shape: f32[16,128], index: 0, kind: input, shape index: {}]   ;;  %s1971_s1 = inlined_call_operand.vmem [shape: f32[128,384], index: 1, kind: input, shape index: {}]   ;;  %s1972_s2 = inlined_call_operand.vmem [shape: f32[128,128], index: 2, kind: input, shape index: {}]   ;;  %s1973_s3 = inlined_call_operand.vmem [shape: f32[128,128], index: 3, kind: input, shape index: {}]   ;;  %s1974_s4 = inlined_call_operand.vmem [shape: f32[128,128], index: 4, kind: input, shape index: {}]   ;;  %s1975_s5 = inlined_call_operand.vmem [shape: f32[8,384], index: 5, kind: input, shape index: {}]   ;;  %s1976_s6 = inlined_call_operand.vmem [shape: f32[32,128], index: 6, kind: input, shape index: {}]   ;;  %s1977_s7 = inlined_call_operand.vmem [shape: f32[16,128], index: 7, kind: output, shape index: {}]  }
   0x1 LB: > { %s1075_s25 = sadd.s32 4294967295, %s1487_s24   ;;  %p1079_p0 = scmp.ge.s32.totalorder %s1487_s24, 1  ;;  %s1487_s24 = sphi %s1532_s24, %s17_s24  }
   0x2   : > { %p236_p1 = scmp.lt.s32.totalorder %s1487_s24, 3 }
   0x4   : > { %p237_p2 = pnand %p1079_p0, %p236_p1 }
   0x5   : > { %v284_v0 = vld [vmem:[%s1971_s1 + $0x8] sm:$0xff] (!%p237_p2)  ;;  %v287_v1 = vld [vmem:[%s1971_s1 + $0x20] sm:$0xff] (!%p237_p2)  ;;  %v286_v4 = vld [vmem:[%s1971_s1 + $0x18] sm:$0xff] (!%p237_p2)  ;;  %v1489_v7 = vmov (!%p237_p2), 0.0   ;;  %v1490_v8 = vmov (!%p237_p2), 0.0|0.0   ;;  %p1641_p3 = scmp.lt.s32.totalorder (!%p237_p2), %s1075_s25, 1 }
   0x6   : > { %240 = sbr.rel (%p237_p2) target bundleno = 1996 (0x7cc), region = 48  ;;  %v283_v2 = vld [vmem:[%s1971_s1] sm:$0xff] (!%p237_p2)  ;;  %v1322_v3 = vpack.c.bf16 (!%p237_p2), %v287_v1, %v284_v0  ;;  %v290_v5 = vld [vmem:[%s1971_s1 + $0x38] sm:$0xff] (!%p237_p2)  ;;  %v293_v6 = vld [vmem:[%s1971_s1 + $0x50] sm:$0xff] (!%p237_p2)  ;;  %411 = vmatprep.mubr.f32.mxu0 (!%p237_p2), %v1489_v7  ;;  %1354 = vmatprep.subr.bf16.mxu1 (!%p237_p2), %v1490_v8  ;;  %vm1491_vm0 = vmmov (!%p237_p2), 0   ;;  %vm581_vm1 = vcmask (!%p237_p2), 64512  }
   0x7   : > { %v1324_v9 = vpack.c.bf16 (!%p237_p2), %v286_v4, %v283_v2  ;;  %v1326_v10 = vpack.c.bf16 (!%p237_p2), %v293_v6, %v290_v5  ;;  %v289_v11 = vld [vmem:[%s1971_s1 + $0x30] sm:$0xff] (!%p237_p2)  ;;  %v292_v12 = vld [vmem:[%s1971_s1 + $0x48] sm:$0xff] (!%p237_p2)  ;;  %v299_v14 = vld [vmem:[%s1971_s1 + $0x80] sm:$0xff] (!%p237_p2)  ;;  %1198 = vmatprep.mubr.msk.f32.mxu1 (!%p237_p2), %vm1491_vm0, %v1489_v7 }
   0x8   : > { %v296_v13 = vld [vmem:[%s1971_s1 + $0x68] sm:$0xff] (!%p237_p2)  ;;  %1323 = vmatprep.subr.bf16.mxu0 (!%p237_p2), %v1322_v3  ;;  %v1328_v15 = vpack.c.bf16 (!%p237_p2), %v292_v12, %v289_v11  ;;  %v295_v17 = vld [vmem:[%s1971_s1 + $0x60] sm:$0xff] (!%p237_p2)  ;;  %v298_v18 = vld [vmem:[%s1971_s1 + $0x78] sm:$0xff] (!%p237_p2) }
   0x9   : > { %1325 = vmatpush1.bf16.msra.mxu0 (!%p237_p2), %v1324_v9  ;;  %v1330_v16 = vpack.c.bf16 (!%p237_p2), %v299_v14, %v296_v13  ;;  %v302_v19 = vld [vmem:[%s1971_s1 + $0x98] sm:$0xff] (!%p237_p2)  ;;  %v305_v20 = vld [vmem:[%s1971_s1 + $0xb0] sm:$0xff] (!%p237_p2)  ;;  %v1332_v21 = vpack.c.bf16 (!%p237_p2), %v298_v18, %v295_v17  ;;  %v304_v24 = vld [vmem:[%s1971_s1 + $0xa8] sm:$0xff] (!%p237_p2)  ;;  %v332_v13 = vlaneseq (!%p237_p2) }
   0xa   : > { %1327 = vmatprep.subr.bf16.mxu0 (!%p237_p2), %v1326_v10  ;;  %v1334_v22 = vpack.c.bf16 (!%p237_p2), %v305_v20, %v302_v19  ;;  %v301_v23 = vld [vmem:[%s1971_s1 + $0x90] sm:$0xff] (!%p237_p2)  ;;  %v308_v25 = vld [vmem:[%s1971_s1 + $0xc8] sm:$0xff] (!%p237_p2)  ;;  %v311_v26 = vld [vmem:[%s1971_s1 + $0xe0] sm:$0xff] (!%p237_p2) }
   0xb   : > { %v285_v27 = vld [vmem:[%s1971_s1 + $0x10] sm:$0xff] (!%p237_p2)  ;;  %v288_v28 = vld [vmem:[%s1971_s1 + $0x28] sm:$0xff] (!%p237_p2)  ;;  %v291_v29 = vld [vmem:[%s1971_s1 + $0x40] sm:$0xff] (!%p237_p2)  ;;  %v1336_v30 = vpack.c.bf16 (!%p237_p2), %v304_v24, %v301_v23  ;;  %v1338_v33 = vpack.c.bf16 (!%p237_p2), %v311_v26, %v308_v25  ;;  %v333_v14 = vshrl.u32 (!%p237_p2), %v332_v13, 7 }
   0xc   : > { %v1355_v31 = vpack.c.bf16 (!%p237_p2), %v288_v28, %v285_v27  ;;  %v294_v32 = vld [vmem:[%s1971_s1 + $0x58] sm:$0xff] (!%p237_p2)  ;;  %v307_v34 = vld [vmem:[%s1971_s1 + $0xc0] sm:$0xff] (!%p237_p2)  ;;  %v317_v37 = vld [vmem:[%s1971_s1 + $0x110] sm:$0xff] (!%p237_p2) }
   0xd   : > { %1329 = vmatpush1.bf16.msra.mxu0 %v1328_v15  ;;  %v310_v35 = vld [vmem:[%s1971_s1 + $0xd8] sm:$0xff]  ;;  %v1358_v38 = vpack.c.bf16 %v294_v32, %v291_v29  ;;  %v297_v39 = vld [vmem:[%s1971_s1 + $0x70] sm:$0xff]  ;;  %v300_v40 = vld [vmem:[%s1971_s1 + $0x88] sm:$0xff]  ;;  %s1980_s25 = smov (!%p1641_p3, %s1075_s25), 1  ;;  %v334_v15 = vsub.s32 0, %v333_v14  ;;  %v338_v17 = vsub.s32 1, %v333_v14 }
   0xe   : > { %1331 = vmatprep.subr.bf16.mxu0 %v1330_v16  ;;  %v314_v36 = vld [vmem:[%s1971_s1 + $0xf8] sm:$0xff]  ;;  %1356 = vmatpush3.bf16.msra.mxu1 %v1355_v31  ;;  %v1340_v41 = vpack.c.bf16 %v310_v35, %v307_v34  ;;  %v313_v43 = vld [vmem:[%s1971_s1 + $0xf0] sm:$0xff]  ;;  %v316_v44 = vld [vmem:[%s1971_s1 + $0x108] sm:$0xff]  ;;  %v1361_v47 = vpack.c.bf16 %v300_v40, %v297_v39  ;;  %s1080_s27 = sshll.u32 %s1980_s25, 3  ;;  %v342_v32 = vsub.s32 2, %v333_v14 }
   0xf   : > { %1357 = vmatprep.subr.bf16.mxu1 %v1490_v8  ;;  %v1342_v42 = vpack.c.bf16 %v317_v37, %v314_v36  ;;  %v320_v45 = vld [vmem:[%s1971_s1 + $0x128] sm:$0xff]  ;;  %v323_v46 = vld [vmem:[%s1971_s1 + $0x140] sm:$0xff]  ;;  %v306_v49 = vld [vmem:[%s1971_s1 + $0xb8] sm:$0xff]  ;;  %v1344_v50 = vpack.c.bf16 %v316_v44, %v313_v43  ;;  %s269_s11 = scalar_lea.vmem %s1970_s0, %s1080_s27  ;;  %s273_s22 = scalar_lea.vmem %s1977_s7, %s1080_s27 }
  0x10   : > { %v303_v48 = vld [vmem:[%s1971_s1 + $0xa0] sm:$0xff]  ;;  %v1346_v51 = vpack.c.bf16 %v323_v46, %v320_v45  ;;  %v322_v53 = vld [vmem:[%s1971_s1 + $0x138] sm:$0xff]  ;;  %v329_v55 = vld [vmem:[%s1971_s1 + $0x170] sm:$0xff] }
  0x11   : > { %1333 = vmatpush1.bf16.msra.mxu0 %v1332_v21  ;;  %v319_v52 = vld [vmem:[%s1971_s1 + $0x120] sm:$0xff]  ;;  %v326_v54 = vld [vmem:[%s1971_s1 + $0x158] sm:$0xff]  ;;  %v1364_v56 = vpack.c.bf16 %v306_v49, %v303_v48  ;;  %v309_v57 = vld [vmem:[%s1971_s1 + $0xd0] sm:$0xff] }
  0x12   : > { %1335 = vmatprep.subr.bf16.mxu0 %v1334_v22  ;;  %1359 = vmatpush3.bf16.msra.mxu1 %v1358_v38  ;;  %v312_v58 = vld [vmem:[%s1971_s1 + $0xe8] sm:$0xff]  ;;  %v1348_v59 = vpack.c.bf16 %v322_v53, %v319_v52  ;;  %v1350_v60 = vpack.c.bf16 %v329_v55, %v326_v54  ;;  %v325_v61 = vld [vmem:[%s1971_s1 + $0x150] sm:$0xff]  ;;  %v315_v0 = vld [vmem:[%s1971_s1 + $0x100] sm:$0xff] }
  0x13   : > { %1360 = vmatprep.subr.bf16.mxu1 %v1490_v8  ;;  %v328_v62 = vld [vmem:[%s1971_s1 + $0x168] sm:$0xff]  ;;  %v1367_v63 = vpack.c.bf16 %v312_v58, %v309_v57  ;;  %v318_v1 = vld [vmem:[%s1971_s1 + $0x118] sm:$0xff]  ;;  %v321_v4 = vld [vmem:[%s1971_s1 + $0x130] sm:$0xff] }
  0x14   : > { %v1352_v2 = vpack.c.bf16 %v328_v62, %v325_v61  ;;  %v1370_v3 = vpack.c.bf16 %v318_v1, %v315_v0  ;;  %v324_v5 = vld [vmem:[%s1971_s1 + $0x148] sm:$0xff]  ;;  %v1703_v6 = vld [vmem:[%s269_s11] sm:$0xff]  ;;  %v330_v11 = vld [vmem:[%s1971_s1 + $0x178] sm:$0xff] }
  0x15   : > { %1337 = vmatpush1.bf16.msra.mxu0 %v1336_v30  ;;  %v1373_v9 = vpack.c.bf16 %v324_v5, %v321_v4  ;;  %v327_v10 = vld [vmem:[%s1971_s1 + $0x160] sm:$0xff]  ;;  %v1732_v26 = vld [vmem:[%s1976_s6 + $0x8] sm:$0xff]  ;;  %v1737_v27 = vld [vmem:[%s1976_s6 + $0x10] sm:$0xff] }
  0x16   : > { %1339 = vmatprep.subr.bf16.mxu0 %v1338_v33  ;;  %1362 = vmatpush3.bf16.msra.mxu1 %v1361_v47  ;;  %v1376_v12 = vpack.c.bf16 %v330_v11, %v327_v10  ;;  %v275_v16 = vld [vmem:[%s1975_s5] ss:$8 sm:$0x7]  ;;  %v1744_v30 = vld [vmem:[%s1976_s6 + $0x18] sm:$0xff] }
  0x17   : > { %1363 = vmatprep.subr.bf16.mxu1 %v1490_v8  ;;  %v335_v18 = vrot.slane %v275_v16, %v334_v15  ;;  %v339_v19 = vrot.slane %v275_v16, %v338_v17  ;;  %v1726_v21 = vld [vmem:[%s1976_s6] sm:$0xff]  ;;  %v343_v33 = vrot.slane %v275_v16, %v342_v32  ;;  %v733_v5 = vld [vmem:[%s1972_s2 + $0x18] sm:$0xff]  ;;  %v735_v11 = vld [vmem:[%s1972_s2 + $0x28] sm:$0xff] }
  0x18   : > { %v730_v1 = vld [vmem:[%s1972_s2] sm:$0xff]  ;;  %v736_v13 = vld [vmem:[%s1972_s2 + $0x30] sm:$0xff]  ;;  %v737_v14 = vld [vmem:[%s1972_s2 + $0x38] sm:$0xff] }
  0x19   : > { %1341 = vmatpush1.bf16.msra.mxu0 %v1340_v41  ;;  %v734_v10 = vld [vmem:[%s1972_s2 + $0x20] sm:$0xff]  ;;  %v1388_v15 = vpack.c.bf16 %v737_v14, %v736_v13  ;;  %v739_v17 = vld [vmem:[%s1972_s2 + $0x48] sm:$0xff] }
  0x1a   : > { %1343 = vmatprep.subr.bf16.mxu0 %v1342_v42  ;;  %1365 = vmatpush3.bf16.msra.mxu1 %v1364_v56  ;;  %v738_v16 = vld [vmem:[%s1972_s2 + $0x40] sm:$0xff]  ;;  %v845_v13 = vld [vmem:[%s1973_s3 + $0x68] sm:$0xff] }
  0x1b   : > { %1366 = vmatprep.subr.bf16.mxu1 %v1490_v8 }
  0x1d   : > { %1345 = vmatpush1.bf16.msra.mxu0 %v1344_v50 }
  0x1e   : > { %1347 = vmatprep.subr.bf16.mxu0 %v1346_v51  ;;  %1368 = vmatpush3.bf16.msra.mxu1 %v1367_v63 }
  0x1f   : > { %1369 = vmatprep.subr.bf16.mxu1 %v1490_v8 }
  0x21   : > { %1349 = vmatpush1.bf16.msra.mxu0 %v1348_v59 }
  0x22   : > { %1351 = vmatprep.subr.bf16.mxu0 %v1350_v60  ;;  %1371 = vmatpush3.bf16.msra.mxu1 %v1370_v3  ;;  %v732_v3 = vld [vmem:[%s1972_s2 + $0x10] sm:$0xff] }
  0x23   : > { %1372 = vmatprep.subr.bf16.mxu1 %v1490_v8 }
  0x25   : > { %1353 = vmatpush1.bf16.msra.mxu0 %v1352_v2  ;;  %v731_v2 = vld [vmem:[%s1972_s2 + $0x8] sm:$0xff] }
  0x26   : > { %1378 = vmatprep.subr.bf16.mxu0 %v1490_v8  ;;  %1374 = vmatpush3.bf16.msra.mxu1 %v1373_v9  ;;  %v1379_v4 = vpack.c.bf16 %v731_v2, %v730_v1  ;;  %v1382_v9 = vpack.c.bf16 %v733_v5, %v732_v3  ;;  %v839_v1 = vld [vmem:[%s1973_s3 + $0x38] sm:$0xff]  ;;  %v840_v3 = vld [vmem:[%s1973_s3 + $0x40] sm:$0xff] }
  0x27   : > { %1375 = vmatprep.subr.bf16.mxu1 %v1490_v8 }
  0x28   : > { %412 = vmatmul.mubr.f32.vlgmr.msra.gmra.mrb[0].mxu0 %v1703_v6 }
  0x29   : > { %1249 = vmatprep.mubr.msk.f32.mxu0 %vm1491_vm0, %v1489_v7  ;;  %1380 = vmatpush3.bf16.msra.mxu0 %v1379_v4  ;;  %v841_v4 = vld [vmem:[%s1973_s3 + $0x48] sm:$0xff] }
  0x2a   : > { %1377 = vmatpush3.bf16.msra.mxu1 %v1376_v12  ;;  %1381 = vmatprep.subr.bf16.mxu0 %v1490_v8  ;;  %v1385_v12 = vpack.c.bf16 %v735_v11, %v734_v10  ;;  %v1415_v5 = vpack.c.bf16 %v841_v4, %v840_v3  ;;  %v843_v10 = vld [vmem:[%s1973_s3 + $0x58] sm:$0xff] }
  0x2d   : > { %1199 = vmatmul.mubr.f32.vlgmr.msra.gmra.mrb[0].mxu1 %v1703_v6  ;;  %1383 = vmatpush3.bf16.msra.mxu0 %v1382_v9  ;;  %v842_v9 = vld [vmem:[%s1973_s3 + $0x50] sm:$0xff] }
  0x2e   : > { %1384 = vmatprep.subr.bf16.mxu0 %v1490_v8  ;;  %v1418_v11 = vpack.c.bf16 %v843_v10, %v842_v9 }
  0x31   : > { %1386 = vmatpush3.bf16.msra.mxu0 %v1385_v12  ;;  %v844_v12 = vld [vmem:[%s1973_s3 + $0x60] sm:$0xff] }
  0x32   : > { %1387 = vmatprep.subr.bf16.mxu0 %v1490_v8  ;;  %v1421_v14 = vpack.c.bf16 %v845_v13, %v844_v12  ;;  %v281_v12 = vld [vmem:[%s1975_s5 + $0x6] ss:$0 sm:$0xff] }
  0x35   : > { %1389 = vmatpush3.bf16.msra.mxu0 %v1388_v15  ;;  %v846_v15 = vld [vmem:[%s1973_s3 + $0x70] sm:$0xff] }
  0x36   : > { %1390 = vmatprep.subr.bf16.mxu0 %v1490_v8 }
  0xfb   : > { %v413_v20 = vpop.f32.mrb[0].mxu0 }
  0xfc   : > { %v414_v22 = vadd.f32 %v413_v20, %v335_v18  ;;  %v415_v23 = vpop.f32.mrb[1].mxu0  ;;  %v1391_v18 = vpack.c.bf16 %v739_v17, %v738_v16  ;;  %v847_v16 = vld [vmem:[%s1973_s3 + $0x78] sm:$0xff] }
  0xfd   : > { %v416_v24 = vadd.f32 %v415_v23, %v339_v19  ;;  %v1424_v17 = vpack.c.bf16 %v847_v16, %v846_v15 }
  0xfe   : > { %v492_v25 = vmul.f32 %v1726_v21, %v414_v22  ;;  %v493_v28 = vmul.f32 %v1732_v26, %v414_v22  ;;  %v494_v29 = vmul.f32 %v1737_v27, %v414_v22  ;;  %v495_v31 = vmul.f32 %v1744_v30, %v414_v22  ;;  %1392 = vmatpush3.bf16.msra.mxu0 %v1391_v18  ;;  %v919_v18 = vld [vmem:[%s1974_s4] sm:$0xff] }
  0xff   : > { %1201 = vmatprep.subr.mxu1 %v416_v24  ;;  %1393 = vmatprep.subr.bf16.mxu0 %v1490_v8 }
 0x100   : > { %1202 = vmatpush3.xpose.msra.mxu1 %v416_v24  ;;  %1203 = vmatprep.mubr.f32.mxu1 %v492_v25  ;;  %v484_v34 = vpop.f32.mrb[0].mxu1 }
 0x101   : > { %v485_v35 = vadd.f32 %v484_v34, %v343_v33  ;;  %v1200_v36 = vpop.f32.mrb[1].mxu1 }
 0x102   : > { %v741_v36 = vld [vmem:[%s1972_s2 + $0x58] sm:$0xff] }
 0x103   : > { %1204 = vmatmul.mubr.f32.vlgmr.msra.gmra.mrb[2].mxu1 %v493_v28  ;;  %1209 = vmatprep.subr.mxu1 %v485_v35 }
 0x104   : > { %1206 = vmatprep.mubr.f32.mxu1 %v494_v29  ;;  %1210 = vmatpush3.msra.mxu1 %v485_v35  ;;  %v740_v35 = vld [vmem:[%s1972_s2 + $0x50] sm:$0xff] }
 0x105   : > { %1402 = vmatprep.subr.bf16.mxu1 %v1490_v8 }
 0x107   : > { %1207 = vmatmul.mubr.f32.gmra.mrb[4].mxu1 %v495_v31 }
 0x1d6   : > { %v1205_v37 = vpop.f32.mrb[2].mxu1 }
 0x1d7   : > { %v562_v38 = vpop.f32.mrb[3].mxu1  ;;  %v585_v42 = vsel %vm581_vm1, %v1205_v37, -inf }
 0x1d8   : > { %v582_v39 = vsel %vm581_vm1, %v562_v38, -inf }
 0x1d9   : > { %583 = vmax.xlane.f32.xlu0 %v582_v39  ;;  %v743_v39 = vld [vmem:[%s1972_s2 + $0x68] sm:$0xff] }
 0x1da   : > { %v1208_v40 = vpop.f32.mrb[4].mxu1 }
 0x1db   : > { %v572_v41 = vpop.f32.mrb[5].mxu1  ;;  %v591_v44 = vsel %vm581_vm1, %v1208_v40, -inf }
 0x1dc   : > { %v588_v43 = vsel %vm581_vm1, %v572_v41, -inf }
 0x1dd   : > { %586 = vmax.xlane.f32.xlu0 %v585_v42  ;;  %589 = vmax.xlane.f32.xlu1 %v588_v43  ;;  %v745_v42 = vld [vmem:[%s1972_s2 + $0x78] sm:$0xff] }
 0x1e1   : > { %592 = vmax.xlane.f32.xlu1 %v591_v44 }
 0x266   : > { %v584_v45 = vpop.xlane.xlu0 %583 }
 0x267   : > { %v594_v46 = vsub.f32 %v562_v38, %v584_v45  ;;  %v742_v38 = vld [vmem:[%s1972_s2 + $0x60] sm:$0xff] }
 0x269   : > { %v598_v47 = vmul.f32 1.442695, %v594_v46 }
 0x26a   : > { %v587_v48 = vpop.xlane.xlu0 %586  ;;  %v590_v49 = vpop.xlane.xlu1 %589 }
 0x26b   : > { %1461 = vpow2.f32 %v598_v47  ;;  %v595_v50 = vsub.f32 %v1205_v37, %v587_v48  ;;  %v596_v51 = vsub.f32 %v572_v41, %v590_v49  ;;  %v1394_v37 = vpack.c.bf16 %v741_v36, %v740_v35  ;;  %v744_v41 = vld [vmem:[%s1972_s2 + $0x70] sm:$0xff]  ;;  %v928_v35 = vld [vmem:[%s1974_s4 + $0x48] sm:$0xff] }
 0x26c   : > { %v1400_v43 = vpack.c.bf16 %v745_v42, %v744_v41  ;;  %v932_v41 = vld [vmem:[%s1974_s4 + $0x68] sm:$0xff] }
 0x26d   : > { %v600_v52 = vmul.f32 1.442695, %v595_v50  ;;  %v602_v53 = vmul.f32 1.442695, %v596_v51  ;;  %1395 = vmatpush3.bf16.msra.mxu0 %v1394_v37  ;;  %v929_v37 = vld [vmem:[%s1974_s4 + $0x50] sm:$0xff] }
 0x26e   : > { %v593_v54 = vpop.xlane.xlu1 %592  ;;  %1396 = vmatprep.subr.bf16.mxu0 %v1490_v8 }
 0x26f   : > { %1463 = vpow2.f32 %v600_v52  ;;  %v597_v55 = vsub.f32 %v1208_v40, %v593_v54  ;;  %v1397_v40 = vpack.c.bf16 %v743_v39, %v742_v38  ;;  %v930_v38 = vld [vmem:[%s1974_s4 + $0x58] sm:$0xff] }
 0x270   : > { %1465 = vpow2.f32 %v602_v53  ;;  %v1442_v39 = vpack.c.bf16 %v930_v38, %v929_v37 }
 0x271   : > { %v604_v56 = vmul.f32 1.442695, %v597_v55  ;;  %1398 = vmatpush3.bf16.msra.mxu0 %v1397_v40  ;;  %v931_v40 = vld [vmem:[%s1974_s4 + $0x60] sm:$0xff] }
 0x272   : > { %1399 = vmatprep.subr.bf16.mxu0 %v1490_v8  ;;  %v1445_v42 = vpack.c.bf16 %v932_v41, %v931_v40 }
 0x273   : > { %1467 = vpow2.f32 %v604_v56 }
 0x275   : > { %v1462_v57 = vpop.eup %1461  ;;  %1401 = vmatpush3.bf16.msra.mxu0 %v1400_v43 }
 0x276   : > { %v606_v58 = vsel %vm581_vm1, %v1462_v57, 0.0  ;;  %1426 = vmatprep.subr.bf16.mxu0 %v1490_v8 }
 0x277   : > { %607 = vadd.xlane.f32.xlu0 %v606_v58 }
 0x279   : > { %v1464_v59 = vpop.eup %1463 }
 0x27a   : > { %v1466_v60 = vpop.eup %1465  ;;  %v609_v61 = vsel %vm581_vm1, %v1464_v59, 0.0 }
 0x27b   : > { %610 = vadd.xlane.f32.xlu1 %v609_v61  ;;  %v612_v62 = vsel %vm581_vm1, %v1466_v60, 0.0 }
 0x27c   : > { %613 = vadd.xlane.f32.xlu0 %v612_v62  ;;  %v836_v62 = vld [vmem:[%s1973_s3 + $0x20] sm:$0xff] }
 0x27d   : > { %v1468_v63 = vpop.eup %1467 }
 0x27e   : > { %v615_v0 = vsel %vm581_vm1, %v1468_v63, 0.0 }
 0x27f   : > { %616 = vadd.xlane.f32.xlu1 %v615_v0 }
 0x304   : > { %v608_v19 = vpop.xlane.xlu0 %607 }
 0x305   : > { %1469 = vrcp.f32 %v608_v19  ;;  %v920_v19 = vld [vmem:[%s1974_s4 + $0x8] sm:$0xff] }
 0x308   : > { %v611_v20 = vpop.xlane.xlu1 %610 }
 0x309   : > { %v614_v22 = vpop.xlane.xlu0 %613  ;;  %1471 = vrcp.f32 %v611_v20  ;;  %v921_v20 = vld [vmem:[%s1974_s4 + $0x10] sm:$0xff] }
 0x30a   : > { %1473 = vrcp.f32 %v614_v22  ;;  %v1427_v22 = vpack.c.bf16 %v920_v19, %v919_v18 }
 0x30c   : > { %v617_v23 = vpop.xlane.xlu1 %616 }
 0x30d   : > { %1475 = vrcp.f32 %v617_v23  ;;  %v922_v23 = vld [vmem:[%s1974_s4 + $0x18] sm:$0xff] }
 0x30f   : > { %v1470_v24 = vpop.eup %1469 }
 0x310   : > { %v622_v25 = vmul.f32 %v1470_v24, %v1462_v57  ;;  %v1430_v24 = vpack.c.bf16 %v922_v23, %v921_v20 }
 0x312   : > { %1211 = vmatprep.mubr.msk.f32.mxu1 %vm581_vm1, %v622_v25  ;;  %v923_v25 = vld [vmem:[%s1974_s4 + $0x20] sm:$0xff] }
 0x313   : > { %v1472_v28 = vpop.eup %1471 }
 0x314   : > { %v1474_v29 = vpop.eup %1473  ;;  %v623_v31 = vmul.f32 %v1472_v28, %v1464_v59  ;;  %v924_v28 = vld [vmem:[%s1974_s4 + $0x28] sm:$0xff] }
 0x315   : > { %v624_v32 = vmul.f32 %v1474_v29, %v1466_v60  ;;  %v1433_v29 = vpack.c.bf16 %v924_v28, %v923_v25 }
 0x316   : > { %1212 = vmatmul.mubr.msk.f32.vlgmr.msra.gmra.mrb[6].mxu1 %vm581_vm1, %v623_v31  ;;  %v925_v31 = vld [vmem:[%s1974_s4 + $0x30] sm:$0xff] }
 0x317   : > { %v1476_v33 = vpop.eup %1475  ;;  %1214 = vmatprep.mubr.msk.f32.mxu1 %vm581_vm1, %v624_v32  ;;  %v926_v32 = vld [vmem:[%s1974_s4 + $0x38] sm:$0xff] }
 0x318   : > { %v625_v34 = vmul.f32 %v1476_v33, %v1468_v63  ;;  %v837_v63 = vld [vmem:[%s1973_s3 + $0x28] sm:$0xff]  ;;  %v1436_v33 = vpack.c.bf16 %v926_v32, %v925_v31 }
 0x319   : > { %v1409_v0 = vpack.c.bf16 %v837_v63, %v836_v62 }
 0x31a   : > { %1215 = vmatmul.mubr.msk.f32.gmra.mrb[8].mxu1 %vm581_vm1, %v625_v34  ;;  %v927_v34 = vld [vmem:[%s1974_s4 + $0x40] sm:$0xff] }
 0x31b   : > { %1284 = vmatprep.mubr.msk.f32.mxu1 %vm1491_vm0, %v1489_v7  ;;  %v1439_v36 = vpack.c.bf16 %v928_v35, %v927_v34 }
 0x3e9   : > { %v1213_v44 = vpop.f32.mrb[6].mxu1 }
 0x3ea   : > { %v724_v45 = vmul.f32 %v1213_v44, %v1732_v26  ;;  %v704_v46 = vpop.f32.mrb[7].mxu1  ;;  %v832_v26 = vld [vmem:[%s1973_s3] sm:$0xff] }
 0x3eb   : > { %v723_v47 = vmul.f32 %v704_v46, %v1726_v21  ;;  %v833_v21 = vld [vmem:[%s1973_s3 + $0x8] sm:$0xff] }
 0x3ec   : > { %v1403_v55 = vpack.c.bf16 %v833_v21, %v832_v26  ;;  %v933_v21 = vld [vmem:[%s1974_s4 + $0x70] sm:$0xff] }
 0x3ed   : > { %v727_v48 = vadd.f32 %v724_v45, %v723_v47  ;;  %v1216_v49 = vpop.f32.mrb[8].mxu1 }
 0x3ee   : > { %v714_v50 = vpop.f32.mrb[9].mxu1  ;;  %v726_v52 = vmul.f32 %v1216_v49, %v1744_v30  ;;  %v835_v30 = vld [vmem:[%s1973_s3 + $0x18] sm:$0xff]  ;;  %1404 = vmatpush3.bf16.msra.mxu1 %v1403_v55 }
 0x3ef   : > { %v725_v51 = vmul.f32 %v714_v50, %v1737_v27  ;;  %v834_v27 = vld [vmem:[%s1973_s3 + $0x10] sm:$0xff]  ;;  %1405 = vmatprep.subr.bf16.mxu1 %v1490_v8 }
 0x3f0   : > { %v1406_v56 = vpack.c.bf16 %v835_v30, %v834_v27  ;;  %v934_v27 = vld [vmem:[%s1974_s4 + $0x78] sm:$0xff]  ;;  %v279_v30 = vld [vmem:[%s1975_s5 + $0x4] ss:$0 sm:$0xff] }
 0x3f1   : > { %v728_v53 = vadd.f32 %v727_v48, %v725_v51  ;;  %v1448_v55 = vpack.c.bf16 %v934_v27, %v933_v21 }
 0x3f2   : > { %1407 = vmatpush3.bf16.msra.mxu1 %v1406_v56 }
 0x3f3   : > { %v729_v54 = vadd.f32 %v728_v53, %v726_v52  ;;  %1408 = vmatprep.subr.bf16.mxu1 %v1490_v8  ;;  %v277_v52 = vld [vmem:[%s1975_s5 + $0x2] ss:$0 sm:$0xff] }
 0x3f5   : > { %1250 = vmatmul.mubr.f32.vlgmr.msra.gmra.mrb[2].mxu0 %v729_v54 }
 0x3f6   : > { %1319 = vmatprep.mubr.msk.f32.mxu0 %vm1491_vm0, %v1489_v7  ;;  %v276_v7 = vld [vmem:[%s1975_s5 + $0x1] ss:$0 sm:$0xff]  ;;  %1410 = vmatpush3.bf16.msra.mxu1 %v1409_v0 }
 0x3f7   : > { %1411 = vmatprep.subr.bf16.mxu1 %v1490_v8  ;;  %1428 = vmatpush3.bf16.msra.mxu0 %v1427_v22 }
 0x3f8   : > { %1429 = vmatprep.subr.bf16.mxu0 %v1490_v8 }
 0x3fb   : > { %1431 = vmatpush3.bf16.msra.mxu0 %v1430_v24 }
 0x3fc   : > { %1432 = vmatprep.subr.bf16.mxu0 %v1490_v8 }
 0x3ff   : > { %1434 = vmatpush3.bf16.msra.mxu0 %v1433_v29 }
 0x400   : > { %1435 = vmatprep.subr.bf16.mxu0 %v1490_v8 }
 0x403   : > { %1437 = vmatpush3.bf16.msra.mxu0 %v1436_v33 }
 0x404   : > { %1438 = vmatprep.subr.bf16.mxu0 %v1490_v8 }
 0x407   : > { %1440 = vmatpush3.bf16.msra.mxu0 %v1439_v36 }
 0x408   : > { %1441 = vmatprep.subr.bf16.mxu0 %v1490_v8 }
 0x40b   : > { %1443 = vmatpush3.bf16.msra.mxu0 %v1442_v39 }
 0x40c   : > { %1444 = vmatprep.subr.bf16.mxu0 %v1490_v8 }
 0x40f   : > { %1446 = vmatpush3.bf16.msra.mxu0 %v1445_v42 }
 0x410   : > { %1447 = vmatprep.subr.bf16.mxu0 %v1490_v8 }
 0x413   : > { %1449 = vmatpush3.bf16.msra.mxu0 %v1448_v55 }
 0x4c8   : > { %v812_v57 = vpop.f32.mrb[2].mxu0 }
 0x4c9   : > { %v813_v58 = vadd.f32 %v812_v57, %v276_v7  ;;  %v1251_v59 = vpop.f32.mrb[3].mxu0 }
 0x4ca   : > { %v280_v59 = vld [vmem:[%s1975_s5 + $0x5] ss:$0 sm:$0xff] }
 0x4cb   : > { %v1842_v60 = vadd.f32 %v813_v58, %v1703_v6  ;;  %v838_v6 = vld [vmem:[%s1973_s3 + $0x30] sm:$0xff] }
 0x4cc   : > { %v1412_v2 = vpack.c.bf16 %v839_v1, %v838_v6 }
 0x4cd   : > { %817 = vadd.xlane.f32.xlu0 %v1842_v60  ;;  %v820_v61 = vmul.f32 %v1842_v60, %v1842_v60 }
 0x4ce   : > { %1413 = vmatpush3.bf16.msra.mxu1 %v1412_v2 }
 0x4cf   : > { %821 = vadd.xlane.f32.xlu1 %v820_v61  ;;  %1414 = vmatprep.subr.bf16.mxu1 %v1490_v8 }
 0x4d2   : > { %1416 = vmatpush3.bf16.msra.mxu1 %v1415_v5 }
 0x4d3   : > { %1417 = vmatprep.subr.bf16.mxu1 %v1490_v8 }
 0x4d6   : > { %1419 = vmatpush3.bf16.msra.mxu1 %v1418_v11 }
 0x4d7   : > { %1420 = vmatprep.subr.bf16.mxu1 %v1490_v8 }
 0x4da   : > { %1422 = vmatpush3.bf16.msra.mxu1 %v1421_v14  ;;  %v282_v14 = vld [vmem:[%s1975_s5 + $0x7] ss:$0 sm:$0xff] }
 0x4db   : > { %1423 = vmatprep.subr.bf16.mxu1 %v1490_v8  ;;  %v278_v8 = vld [vmem:[%s1975_s5 + $0x3] ss:$0 sm:$0xff] }
 0x4de   : > { %1425 = vmatpush3.bf16.msra.mxu1 %v1424_v17 }
 0x55a   : > { %v818_v43 = vpop.xlane.xlu0 %817 }
 0x55b   : > { %v819_v44 = vmul.f32 0.03125, %v818_v43 }
 0x55c   : > { %v822_v45 = vpop.xlane.xlu1 %821 }
 0x55d   : > { %v824_v46 = vmul.f32 %v819_v44, %v819_v44  ;;  %v823_v47 = vmul.f32 0.03125, %v822_v45  ;;  %v826_v50 = vsub.f32 %v1842_v60, %v819_v44 }
 0x55f   : > { %v825_v48 = vsub.f32 %v823_v47, %v824_v46 }
 0x561   : > { %v827_v49 = vadd.f32 1e-05, %v825_v48 }
 0x563   : > { %1477 = vrsqrt.f32 %v827_v49 }
 0x56d   : > { %v1478_v51 = vpop.eup %1477 }
 0x56e   : > { %v829_v53 = vmul.f32 %v1478_v51, %v826_v50 }
 0x570   : > { %v830_v54 = vmul.f32 %v829_v53, %v277_v52 }
 0x572   : > { %v831_v26 = vadd.f32 %v830_v54, %v278_v8 }
 0x574   : > { %1285 = vmatmul.mubr.f32.vlgmr.msra.gmra.mrb[10].mxu1 %v831_v26 }
 0x647   : > { %v914_v56 = vpop.f32.mrb[10].mxu1 }
 0x648   : > { %v915_v7 = vadd.f32 %v914_v56, %v279_v30  ;;  %v1286_v57 = vpop.f32.mrb[11].mxu1 }
 0x64a   : > { %v918_v58 = vmax.f32 %v915_v7, 0.0 }
 0x64c   : > { %1320 = vmatmul.mubr.f32.vlgmr.msra.gmra.mrb[4].mxu0 %v918_v58 }
 0x71f   : > { %v1001_v60 = vpop.f32.mrb[4].mxu0 }
 0x720   : > { %v1002_v61 = vadd.f32 %v1001_v60, %v280_v59  ;;  %v1321_v62 = vpop.f32.mrb[5].mxu0 }
 0x722   : > { %v1005_v63 = vadd.f32 %v1002_v61, %v831_v26 }
 0x724   : > { %1006 = vadd.xlane.f32.xlu0 %v1005_v63  ;;  %v1009_v0 = vmul.f32 %v1005_v63, %v1005_v63 }
 0x726   : > { %1010 = vadd.xlane.f32.xlu1 %v1009_v0 }
 0x7b1   : > { %v1007_v6 = vpop.xlane.xlu0 %1006 }
 0x7b2   : > { %v1008_v1 = vmul.f32 0.03125, %v1007_v6 }
 0x7b3   : > { %v1011_v2 = vpop.xlane.xlu1 %1010 }
 0x7b4   : > { %v1013_v3 = vmul.f32 %v1008_v1, %v1008_v1  ;;  %v1012_v4 = vmul.f32 0.03125, %v1011_v2  ;;  %v1015_v10 = vsub.f32 %v1005_v63, %v1008_v1 }
 0x7b6   : > { %v1014_v5 = vsub.f32 %v1012_v4, %v1013_v3 }
 0x7b8   : > { %v1016_v9 = vadd.f32 1e-05, %v1014_v5 }
 0x7ba   : > { %1479 = vrsqrt.f32 %v1016_v9 }
 0x7c4   : > { %v1480_v11 = vpop.eup %1479 }
 0x7c5   : > { %v1018_v13 = vmul.f32 %v1480_v11, %v1015_v10 }
 0x7c7   : > { %v1019_v15 = vmul.f32 %v1018_v13, %v281_v12 }
 0x7c9   : > { %v1020_v16 = vadd.f32 %v1019_v15, %v282_v14 }
 0x7cb   : > { %1021 = vst [vmem:[%s273_s22] sm:$0xff] %v1020_v16 }
 0x7cc PF: > { %s17_s24 = sadd.s32 1, %s1487_s24  }
 0x7cd   : > { %p14_p4 = scmp.ge.s32.totalorder %s17_s24, 4  }
 0x7cf   :  { %16 = sbr.rel (!%p14_p4) target bundleno = 1 (0x1), region = 78 }

</bundles_post_ra>
